<compile_context>
chip_gen: v5e
topology: v5e:2x2
jax: 0.10.0
libtpu: 0.0.40
codegen_flags: <defaults>
</compile_context>

<pallas_src>
import jax
import jax.numpy as jnp
from jax.experimental import pallas as pl
from jax.experimental.pallas import tpu as pltpu


def _flow_kernel(xt_ref, w1t_ref, b1t_ref, w2t_ref, b2t_ref, yt_ref, ld_ref):
    # Transposed ("batch on lanes") layout:
    #   xt_ref  : (F, tile_b)        features on sublanes, batch on lanes
    #   w1t_ref : (L*H, split)       all layers' first-Linear weights, transposed+fused
    #   b1t_ref : (L*H, 1)
    #   w2t_ref : (L, 2*split, H)    per-layer second-Linear weights, transposed (s|t fused)
    #   b2t_ref : (L, 2*split, 1)
    #   yt_ref  : (F, tile_b)        full output incl. x1 pass-through
    #   ld_ref  : (1, tile_b)        lane-dense log-det row
    F = xt_ref.shape[0]
    split = F // 2
    L, _, H = w2t_ref.shape
    mm_dtype = w1t_ref.dtype          # f32 by default, bf16 if requested

    x1t = xt_ref[:split, :]           # (split, tile_b)  unchanged across layers
    x2t = xt_ref[split:, :]           # (split, tile_b)

    # ONE wide MXU call for every layer's first Linear + ReLU:
    #   (L*H, split) @ (split, tile_b) -> (L*H, tile_b)
    h_all = jnp.dot(w1t_ref[...], x1t.astype(mm_dtype),
                    preferred_element_type=jnp.float32) + b1t_ref[...]
    h_all = jnp.maximum(h_all, 0.0)

    s_acc = jnp.zeros_like(x2t)

    # Static loop over layers (L is small & known at trace time).
    for l in range(L):
        h_l = h_all[l * H:(l + 1) * H, :]                 # 8-aligned sublane slice
        # Fused s/t second Linear: ONE dot per layer.
        #   (2*split, H) @ (H, tile_b) -> (2*split, tile_b)
        p = jnp.dot(w2t_ref[l], h_l.astype(mm_dtype),
                    preferred_element_type=jnp.float32) + b2t_ref[l]
        s = jnp.tanh(p[:split, :])                        # sublane slice (8-aligned)
        t = p[split:, :]
        x2t = x2t * jnp.exp(s) + t                        # lane-dense VPU/EUP chain
        s_acc = s_acc + s                                 # defer the reduction

    yt_ref[:split, :] = x1t                               # pass-through written in-kernel
    yt_ref[split:, :] = x2t
    ld_ref[...] = jnp.sum(s_acc, axis=0, keepdims=True)   # single sublane reduction


def _default_tile_b(B):
    # Small B: one full block (block dim equal to the array dim is always legal);
    # extra grid steps are pure overhead on v5e/v6e.
    if B <= 512 or B % 128 != 0:
        return B
    # Large B: largest 128-multiple tile <= 512 that yields >= 2 grid steps
    # ("parallel" axis -> both v7x TensorCores, double-buffered HBM pipelining).
    for t in (512, 256, 128):
        if B % t == 0:
            return t
    return B


def normalizing_flow_forward(x, w1, b1, w2, b2, *, tile_b=None,
                             matmul_dtype=jnp.float32):
    """Forward pass of NormalizingFlow.

    x:  (B, F) float32, F even.
    w1: (L, split, H)    b1: (L, H)         -- first Linear  (JAX convention y = x @ W + b)
    w2: (L, H, 2*split)  b2: (L, 2*split)   -- second Linear
    Returns (y, log_det_jacobian) with shapes (B, F) and (B,).
    """
    B, F = x.shape
    assert F % 2 == 0, "in_features must be even"
    split = F // 2
    L, _, H = w1.shape

    if tile_b is None:
        tile_b = _default_tile_b(B)
    assert B % tile_b == 0, "tile_b must divide B"

    # Batch-on-lanes relayout (one transpose in / one out; elide if the
    # producer/consumer already use the transposed layout).
    x_t = x.T                                                      # (F, B)

    # Weight re-layout (free: done once under jit).
    w1_t = jnp.transpose(w1, (0, 2, 1)).reshape(L * H, split).astype(matmul_dtype)
    b1_t = b1.reshape(L * H, 1).astype(jnp.float32)
    w2_t = jnp.transpose(w2, (0, 2, 1)).astype(matmul_dtype)       # (L, 2*split, H)
    b2_t = b2.reshape(L, 2 * split, 1).astype(jnp.float32)

    grid = (B // tile_b,)
    batch_spec = pl.BlockSpec((F, tile_b), lambda i: (0, i))

    y_t, ld = pl.pallas_call(
        _flow_kernel,
        grid=grid,
        in_specs=[
            batch_spec,                                            # x^T
            pl.BlockSpec((L * H, split), lambda i: (0, 0)),        # w1 fused^T
            pl.BlockSpec((L * H, 1), lambda i: (0, 0)),            # b1 fused^T
            pl.BlockSpec((L, 2 * split, H), lambda i: (0, 0, 0)),  # w2^T (s|t fused)
            pl.BlockSpec((L, 2 * split, 1), lambda i: (0, 0, 0)),  # b2^T
        ],
        out_specs=(
            pl.BlockSpec((F, tile_b), lambda i: (0, i)),           # y^T (lane-dense)
            pl.BlockSpec((1, tile_b), lambda i: (0, i)),           # log_det (lane-dense)
        ),
        out_shape=(
            jax.ShapeDtypeStruct((F, B), jnp.float32),
            jax.ShapeDtypeStruct((1, B), jnp.float32),
        ),
        compiler_params=pltpu.CompilerParams(
            dimension_semantics=("parallel",)),
    )(x_t, w1_t, b1_t, w2_t, b2_t)

    return y_t.T, ld[0]


def _reference_forward(x, w1, b1, w2, b2):
    """Pure-JAX reference mirroring the PyTorch module (full-precision matmuls)."""
    split = x.shape[1] // 2
    L = w1.shape[0]
    hi = jax.lax.Precision.HIGHEST
    x1, x2 = x[:, :split], x[:, split:]
    ld = jnp.zeros((x.shape[0],), jnp.float32)
    for l in range(L):
        h = jnp.maximum(jnp.dot(x1, w1[l], precision=hi) + b1[l], 0.0)
        params = jnp.dot(h, w2[l], precision=hi) + b2[l]
        s = jnp.tanh(params[:, :split])
        t = params[:, split:]
        x2 = x2 * jnp.exp(s) + t
        ld = ld + jnp.sum(s, axis=1)
    return jnp.concatenate([x1, x2], axis=1), ld


if __name__ == "__main__":
    B = 256            # -> tile_b=256, grid=(1,) by default (single TC-friendly block)
    IN_FEATURES = 32   # must be even
    HIDDEN = 128       # fixed by the module: nn.Linear(split, 128)
    NUM_LAYERS = 3
    split = IN_FEATURES // 2

    key = jax.random.PRNGKey(0)
    kx, kw1, kb1, kw2, kb2 = jax.random.split(key, 5)

    x = jax.random.normal(kx, (B, IN_FEATURES), dtype=jnp.float32)

    # Deterministic synthetic parameters (shapes from AffineCouplingLayer.__init__,
    # torch Linear default init bounds; stored in JAX convention W = torch_weight.T).
    scale1 = 1.0 / jnp.sqrt(jnp.float32(split))
    scale2 = 1.0 / jnp.sqrt(jnp.float32(HIDDEN))
    w1 = jax.random.uniform(kw1, (NUM_LAYERS, split, HIDDEN),
                            minval=-scale1, maxval=scale1, dtype=jnp.float32)
    b1 = jax.random.uniform(kb1, (NUM_LAYERS, HIDDEN),
                            minval=-scale1, maxval=scale1, dtype=jnp.float32)
    w2 = jax.random.uniform(kw2, (NUM_LAYERS, HIDDEN, 2 * split),
                            minval=-scale2, maxval=scale2, dtype=jnp.float32)
    b2 = jax.random.uniform(kb2, (NUM_LAYERS, 2 * split),
                            minval=-scale2, maxval=scale2, dtype=jnp.float32)

    # tile_b=128 -> grid=(2,) on the "parallel" axis (both TCs on v7x, pipelined DMA).
    fwd = jax.jit(lambda *a: normalizing_flow_forward(*a, tile_b=128))
    y, log_det = fwd(x, w1, b1, w2, b2)
    jax.block_until_ready((y, log_det))

    y_ref, ld_ref = _reference_forward(x, w1, b1, w2, b2)
    assert y.shape == (B, IN_FEATURES) and log_det.shape == (B,)
    assert jnp.allclose(y, y_ref, atol=2e-5, rtol=2e-5), "output mismatch"
    assert jnp.allclose(log_det, ld_ref, atol=2e-5, rtol=2e-5), "log_det mismatch"

    # TODO(synk): bf16 matmul operands (matmul_dtype=jnp.bfloat16) are available for
    # v6e/v7x MXU peak but need a bf16-appropriate tolerance; kept f32 here.

    print("KERNEL_OK")
</pallas_src>

<mosaic_0001>
module attributes {stable_mosaic.version = 11 : i64} {
  func.func @_flow_kernel(%arg0: i32, %arg1: memref<32x128xf32, #tpu.memory_space<vmem>>, %arg2: memref<384x16xf32, #tpu.memory_space<vmem>>, %arg3: memref<384x1xf32, #tpu.memory_space<vmem>>, %arg4: memref<3x32x128xf32, #tpu.memory_space<vmem>>, %arg5: memref<3x32x1xf32, #tpu.memory_space<vmem>>, %arg6: memref<32x128xf32, #tpu.memory_space<vmem>>, %arg7: memref<1x128xf32, #tpu.memory_space<vmem>>) attributes {dimension_semantics = [#tpu.dimension_semantics<parallel>], iteration_bounds = array<i64: 2>, scalar_prefetch = 0 : i64, scratch_operands = 0 : i64, tpu.core_type = #tpu.core_type<tc>, window_params = [{transform_indices = @transform_0, window_bounds = array<i64: 32, 128>}, {pipeline_mode = #tpu.pipeline_mode<synchronous>, transform_indices = @transform_1, window_bounds = array<i64: 384, 16>}, {pipeline_mode = #tpu.pipeline_mode<synchronous>, transform_indices = @transform_2, window_bounds = array<i64: 384, 1>}, {pipeline_mode = #tpu.pipeline_mode<synchronous>, transform_indices = @transform_3, window_bounds = array<i64: 3, 32, 128>}, {pipeline_mode = #tpu.pipeline_mode<synchronous>, transform_indices = @transform_4, window_bounds = array<i64: 3, 32, 1>}, {transform_indices = @transform_5, window_bounds = array<i64: 32, 128>}, {transform_indices = @transform_6, window_bounds = array<i64: 1, 128>}]} {
    %c0 = arith.constant 0 : index
    %c0_0 = arith.constant 0 : index
    %0 = vector.load %arg1[%c0, %c0_0] : memref<32x128xf32, #tpu.memory_space<vmem>>, vector<16x128xf32>
    %c16 = arith.constant 16 : index
    %c0_1 = arith.constant 0 : index
    %1 = vector.load %arg1[%c16, %c0_1] : memref<32x128xf32, #tpu.memory_space<vmem>>, vector<16x128xf32>
    %c0_2 = arith.constant 0 : index
    %c0_3 = arith.constant 0 : index
    %2 = vector.load %arg2[%c0_2, %c0_3] : memref<384x16xf32, #tpu.memory_space<vmem>>, vector<384x16xf32>
    %cst = arith.constant dense<0.000000e+00> : vector<384x128xf32>
    %3 = tpu.matmul %2, %0, %cst {dimension_numbers = #tpu.dot_dimension_numbers<[1], [0], [0], [1], [0, 0, 1, 1], [], []>} : vector<384x16xf32>, vector<16x128xf32>, vector<384x128xf32> -> vector<384x128xf32>
    %c0_4 = arith.constant 0 : index
    %c0_5 = arith.constant 0 : index
    %4 = vector.load %arg3[%c0_4, %c0_5] : memref<384x1xf32, #tpu.memory_space<vmem>>, vector<384x1xf32>
    %5 = vector.broadcast %4 : vector<384x1xf32> to vector<384x128xf32>
    %6 = arith.addf %3, %5 : vector<384x128xf32>
    %cst_6 = arith.constant 0.000000e+00 : f32
    %7 = vector.broadcast %cst_6 : f32 to vector<384x128xf32>
    %8 = arith.maximumf %6, %7 : vector<384x128xf32>
    %cst_7 = arith.constant 0.000000e+00 : f32
    %9 = vector.broadcast %cst_7 : f32 to vector<16x128xf32>
    %10 = vector.extract_strided_slice %8 {offsets = [0, 0], sizes = [128, 128], strides = [1, 1]} : vector<384x128xf32> to vector<128x128xf32>
    %c0_8 = arith.constant 0 : index
    %c0_9 = arith.constant 0 : index
    %c0_10 = arith.constant 0 : index
    %11 = vector.load %arg4[%c0_8, %c0_9, %c0_10] : memref<3x32x128xf32, #tpu.memory_space<vmem>>, vector<1x32x128xf32>
    %12 = vector.shape_cast %11 : vector<1x32x128xf32> to vector<32x128xf32>
    %cst_11 = arith.constant dense<0.000000e+00> : vector<32x128xf32>
    %13 = tpu.matmul %12, %10, %cst_11 {dimension_numbers = #tpu.dot_dimension_numbers<[1], [0], [0], [1], [0, 0, 1, 1], [], []>} : vector<32x128xf32>, vector<128x128xf32>, vector<32x128xf32> -> vector<32x128xf32>
    %c0_12 = arith.constant 0 : index
    %c0_13 = arith.constant 0 : index
    %c0_14 = arith.constant 0 : index
    %14 = vector.load %arg5[%c0_12, %c0_13, %c0_14] : memref<3x32x1xf32, #tpu.memory_space<vmem>>, vector<1x32x1xf32>
    %15 = vector.shape_cast %14 : vector<1x32x1xf32> to vector<32x1xf32>
    %16 = vector.broadcast %15 : vector<32x1xf32> to vector<32x128xf32>
    %17 = arith.addf %13, %16 : vector<32x128xf32>
    %18 = vector.extract_strided_slice %17 {offsets = [0, 0], sizes = [16, 128], strides = [1, 1]} : vector<32x128xf32> to vector<16x128xf32>
    %19 = math.tanh %18 : vector<16x128xf32>
    %20 = vector.extract_strided_slice %17 {offsets = [16, 0], sizes = [16, 128], strides = [1, 1]} : vector<32x128xf32> to vector<16x128xf32>
    %21 = math.exp %19 : vector<16x128xf32>
    %22 = arith.mulf %1, %21 : vector<16x128xf32>
    %23 = arith.addf %22, %20 : vector<16x128xf32>
    %24 = arith.addf %9, %19 : vector<16x128xf32>
    %25 = vector.extract_strided_slice %8 {offsets = [128, 0], sizes = [128, 128], strides = [1, 1]} : vector<384x128xf32> to vector<128x128xf32>
    %c1 = arith.constant 1 : index
    %c0_15 = arith.constant 0 : index
    %c0_16 = arith.constant 0 : index
    %26 = vector.load %arg4[%c1, %c0_15, %c0_16] : memref<3x32x128xf32, #tpu.memory_space<vmem>>, vector<1x32x128xf32>
    %27 = vector.shape_cast %26 : vector<1x32x128xf32> to vector<32x128xf32>
    %cst_17 = arith.constant dense<0.000000e+00> : vector<32x128xf32>
    %28 = tpu.matmul %27, %25, %cst_17 {dimension_numbers = #tpu.dot_dimension_numbers<[1], [0], [0], [1], [0, 0, 1, 1], [], []>} : vector<32x128xf32>, vector<128x128xf32>, vector<32x128xf32> -> vector<32x128xf32>
    %c1_18 = arith.constant 1 : index
    %c0_19 = arith.constant 0 : index
    %c0_20 = arith.constant 0 : index
    %29 = vector.load %arg5[%c1_18, %c0_19, %c0_20] : memref<3x32x1xf32, #tpu.memory_space<vmem>>, vector<1x32x1xf32>
    %30 = vector.shape_cast %29 : vector<1x32x1xf32> to vector<32x1xf32>
    %31 = vector.broadcast %30 : vector<32x1xf32> to vector<32x128xf32>
    %32 = arith.addf %28, %31 : vector<32x128xf32>
    %33 = vector.extract_strided_slice %32 {offsets = [0, 0], sizes = [16, 128], strides = [1, 1]} : vector<32x128xf32> to vector<16x128xf32>
    %34 = math.tanh %33 : vector<16x128xf32>
    %35 = vector.extract_strided_slice %32 {offsets = [16, 0], sizes = [16, 128], strides = [1, 1]} : vector<32x128xf32> to vector<16x128xf32>
    %36 = math.exp %34 : vector<16x128xf32>
    %37 = arith.mulf %23, %36 : vector<16x128xf32>
    %38 = arith.addf %37, %35 : vector<16x128xf32>
    %39 = arith.addf %24, %34 : vector<16x128xf32>
    %40 = vector.extract_strided_slice %8 {offsets = [256, 0], sizes = [128, 128], strides = [1, 1]} : vector<384x128xf32> to vector<128x128xf32>
    %c2 = arith.constant 2 : index
    %c0_21 = arith.constant 0 : index
    %c0_22 = arith.constant 0 : index
    %41 = vector.load %arg4[%c2, %c0_21, %c0_22] : memref<3x32x128xf32, #tpu.memory_space<vmem>>, vector<1x32x128xf32>
    %42 = vector.shape_cast %41 : vector<1x32x128xf32> to vector<32x128xf32>
    %cst_23 = arith.constant dense<0.000000e+00> : vector<32x128xf32>
    %43 = tpu.matmul %42, %40, %cst_23 {dimension_numbers = #tpu.dot_dimension_numbers<[1], [0], [0], [1], [0, 0, 1, 1], [], []>} : vector<32x128xf32>, vector<128x128xf32>, vector<32x128xf32> -> vector<32x128xf32>
    %c2_24 = arith.constant 2 : index
    %c0_25 = arith.constant 0 : index
    %c0_26 = arith.constant 0 : index
    %44 = vector.load %arg5[%c2_24, %c0_25, %c0_26] : memref<3x32x1xf32, #tpu.memory_space<vmem>>, vector<1x32x1xf32>
    %45 = vector.shape_cast %44 : vector<1x32x1xf32> to vector<32x1xf32>
    %46 = vector.broadcast %45 : vector<32x1xf32> to vector<32x128xf32>
    %47 = arith.addf %43, %46 : vector<32x128xf32>
    %48 = vector.extract_strided_slice %47 {offsets = [0, 0], sizes = [16, 128], strides = [1, 1]} : vector<32x128xf32> to vector<16x128xf32>
    %49 = math.tanh %48 : vector<16x128xf32>
    %50 = vector.extract_strided_slice %47 {offsets = [16, 0], sizes = [16, 128], strides = [1, 1]} : vector<32x128xf32> to vector<16x128xf32>
    %51 = math.exp %49 : vector<16x128xf32>
    %52 = arith.mulf %38, %51 : vector<16x128xf32>
    %53 = arith.addf %52, %50 : vector<16x128xf32>
    %54 = arith.addf %39, %49 : vector<16x128xf32>
    %c0_27 = arith.constant 0 : index
    %c0_28 = arith.constant 0 : index
    %55 = vector.load %arg6[%c0_27, %c0_28] : memref<32x128xf32, #tpu.memory_space<vmem>>, vector<16x128xf32>
    tpu.vector_store %arg6[%c0_27, %c0_28], %0 {strides = array<i32>} : memref<32x128xf32, #tpu.memory_space<vmem>>, vector<16x128xf32>,
    %c16_29 = arith.constant 16 : index
    %c0_30 = arith.constant 0 : index
    %56 = vector.load %arg6[%c16_29, %c0_30] : memref<32x128xf32, #tpu.memory_space<vmem>>, vector<16x128xf32>
    tpu.vector_store %arg6[%c16_29, %c0_30], %53 {strides = array<i32>} : memref<32x128xf32, #tpu.memory_space<vmem>>, vector<16x128xf32>,
    %cst_31 = arith.constant dense<0.000000e+00> : vector<128xf32>
    %57 = vector.multi_reduction <add>, %54, %cst_31 [0] : vector<16x128xf32> to vector<128xf32>
    %58 = vector.shape_cast %57 : vector<128xf32> to vector<1x128xf32>
    %c0_32 = arith.constant 0 : index
    %c0_33 = arith.constant 0 : index
    %59 = vector.load %arg7[%c0_32, %c0_33] : memref<1x128xf32, #tpu.memory_space<vmem>>, vector<1x128xf32>
    tpu.vector_store %arg7[%c0_32, %c0_33], %58 {strides = array<i32>} : memref<1x128xf32, #tpu.memory_space<vmem>>, vector<1x128xf32>,
    return
  }
  func.func @transform_0(%arg0: i32) -> (i32, i32) {
    %c0_i32 = arith.constant 0 : i32
    %c0_i32_0 = arith.constant 0 : i32
    return %c0_i32, %arg0 : i32, i32
  }
  func.func @transform_1(%arg0: i32) -> (i32, i32) {
    %c0_i32 = arith.constant 0 : i32
    %c0_i32_0 = arith.constant 0 : i32
    %c0_i32_1 = arith.constant 0 : i32
    return %c0_i32, %c0_i32_0 : i32, i32
  }
  func.func @transform_2(%arg0: i32) -> (i32, i32) {
    %c0_i32 = arith.constant 0 : i32
    %c0_i32_0 = arith.constant 0 : i32
    %c0_i32_1 = arith.constant 0 : i32
    return %c0_i32, %c0_i32_0 : i32, i32
  }
  func.func @transform_3(%arg0: i32) -> (i32, i32, i32) {
    %c0_i32 = arith.constant 0 : i32
    %c0_i32_0 = arith.constant 0 : i32
    %c0_i32_1 = arith.constant 0 : i32
    %c0_i32_2 = arith.constant 0 : i32
    return %c0_i32, %c0_i32_0, %c0_i32_1 : i32, i32, i32
  }
  func.func @transform_4(%arg0: i32) -> (i32, i32, i32) {
    %c0_i32 = arith.constant 0 : i32
    %c0_i32_0 = arith.constant 0 : i32
    %c0_i32_1 = arith.constant 0 : i32
    %c0_i32_2 = arith.constant 0 : i32
    return %c0_i32, %c0_i32_0, %c0_i32_1 : i32, i32, i32
  }
  func.func @transform_5(%arg0: i32) -> (i32, i32) {
    %c0_i32 = arith.constant 0 : i32
    %c0_i32_0 = arith.constant 0 : i32
    return %c0_i32, %arg0 : i32, i32
  }
  func.func @transform_6(%arg0: i32) -> (i32, i32) {
    %c0_i32 = arith.constant 0 : i32
    %c0_i32_0 = arith.constant 0 : i32
    return %c0_i32, %arg0 : i32, i32
  }
}

</mosaic_0001>

<bundles_post_ra>
// kernel: _lambda_.1
= control target key start
LH: loop header
LB: loop body
LE: loop exit
PB: predicated region body
PF: predicated region fallthrough
CT: control target
= control target key end

     0   :  { %12 = vsyncpa [#allocation4], 0  ;;  %s2317_s0 = inlined_call_operand.vmem [shape: f32[32,256], index: 0, kind: input, shape index: {}]   ;;  %s2318_s1 = inlined_call_operand.vmem [shape: f32[384,16], index: 1, kind: input, shape index: {}]   ;;  %s2319_s2 = inlined_call_operand.vmem [shape: f32[384,1], index: 2, kind: input, shape index: {}]   ;;  %s2320_s3 = inlined_call_operand.vmem [shape: f32[3,32,128], index: 3, kind: input, shape index: {}]   ;;  %s2321_s4 = inlined_call_operand.vmem [shape: f32[3,32,1], index: 4, kind: input, shape index: {}]   ;;  %s2322_s5 = inlined_call_operand.hbm [shape: f32[32,256], index: 5, kind: output, shape index: {0}]   ;;  %s2323_s6 = inlined_call_operand.hbm [shape: f32[1,256], index: 6, kind: output, shape index: {1}]  }
   0x1   :  { %14 = vsyncpa [#allocation4 + $0x1], 0 }
   0x2   :  { %15 = vsyncpa [#allocation6], 0 }
   0x3   :  { %17 = vsyncpa [#allocation6 + $0x1], 0  ;;  %s1644_s21 = smov 0   ;;  %s1646_s22 = smov 0  }
   0x4   :  { %s1648_s23 = smov 0   ;;  %s1650_s24 = smov 0  }
   0x5 LB: > { %s1665_s25 = sadd.s32 4294967295, %s1603_s24   ;;  %s1352_s26 = sadd.s32 4294967294, %s1603_s24   ;;  %s1603_s24 = sphi %s1650_s24, %s2339_s24   ;;  %s1599_s23 = sphi %s1648_s23, %s2338_s23   ;;  %s1595_s22 = sphi %s1646_s22, %s2337_s22   ;;  %s1591_s21 = sphi %s1644_s21, %s2336_s21  }
   0x6   : > { %s1669_s27 = sadd.s32 1, %s1603_s24   ;;  %s30_s28 = sadd.s32 1, %s1599_s23 }
   0x7   : > { %s27_s29 = ssub.s32 %s1603_s24, %s1669_s27  ;;  %p37_p0 = scmp.ne.s32.totalorder %s1599_s23, %s1595_s22 }
   0x8   : > { %p28_p1 = scmp.eq.s32.totalorder %s27_s29, 0  ;;  %p38_p2 = scmp.eq.s32.totalorder %s1603_s24, 0 }
   0x9   : > { %p151_p3 = scmp.eq.s32.totalorder %s1665_s25, 1  ;;  %p156_p4 = scmp.ne.s32.totalorder %s1595_s22, %s1591_s21 }
   0xa   : > { %s1681_s30 = scalar_select %p28_p1, %s1599_s23, %s30_s28  }
   0xb   : > { %p39_p5 = por %p38_p2, %p37_p0  ;;  %p1683_p6 = por %p151_p3, %p37_p0 }
   0xc   : > { %p157_p7 = scmp.eq.s32.totalorder %s1352_s26, 1  ;;  %p1354_p9 = scmp.ge.s32.totalorder %s1603_s24, 2 }
   0xe   : > { %p1687_p8 = por %p157_p7, %p156_p4  ;;  %211 = sbr.rel (%p1354_p9) target bundleno = 27 (0x1b), region = 32 }
  0x13   : > { %214 = sbr.rel (!%p39_p5) target bundleno = 27 (0x1b), region = 36  ;;  %s216_s9 = sand.u32 (%p39_p5), 1, %s1599_s23  }
  0x14   : > { %s1356_s10 = sshll.u32 (%p39_p5), %s1603_s24, 3  ;;  %s1355_s11 = sshll.u32 (%p39_p5), %s216_s9, 5 }
  0x15   : > { %s220_s14 = scalar_lea.vmem (%p39_p5), %s2317_s0, %s1356_s10  ;;  %s218_s15 = scalar_lea.vmem (%p39_p5), [#allocation2], %s1355_s11 }
  0x16   : > { %v255_v0 = vld [vmem:[%s220_s14] sm:$0xff] (%p39_p5)  ;;  %v257_v1 = vld [vmem:[%s220_s14 + $0x10] sm:$0xff] (%p39_p5) }
  0x17   : > { %v259_v2 = vld [vmem:[%s220_s14 + $0x20] sm:$0xff] (%p39_p5)  ;;  %256 = vst [vmem:[%s218_s15] sm:$0xff] (%p39_p5), %v255_v0  ;;  %v261_v3 = vld [vmem:[%s220_s14 + $0x30] sm:$0xff] (%p39_p5) }
  0x18   : > { %258 = vst [vmem:[%s218_s15 + $0x8] sm:$0xff] %v257_v1 }
  0x19   : > { %260 = vst [vmem:[%s218_s15 + $0x10] sm:$0xff] %v259_v2 }
  0x1a   : > { %262 = vst [vmem:[%s218_s15 + $0x18] sm:$0xff] %v261_v3 }
  0x1b PF: > { %p1357_p10 = scmp.ge.s32.totalorder %s1603_s24, 1  ;;  %p267_p11 = scmp.lt.s32.totalorder %s1603_s24, 3 }
  0x1d   : > { %p268_p12 = pnand %p1357_p10, %p267_p11 }
  0x1f   : > { %271 = sbr.rel (%p268_p12) target bundleno = 503 (0x1f7), region = 74 }
  0x24   : > { %v363_v4 = vld [vmem:[%s2319_s2 + $0x20] sm:$0xff]  ;;  %v361_v5 = vld [vmem:[%s2319_s2 + $0x10] sm:$0xff]  ;;  %s1711_s28 = sand.u32 1, %s1595_s22   ;;  %v1605_v7 = vmov 0   ;;  %vm647_vm0 = vcmask 130048   ;;  %v328_v11 = vld [vmem:[%s2318_s1 + $0x88] sm:$0xff]  ;;  %s1254_s19 = scalar_lea.hbm %s2323_s6, %s1665_s25 }
  0x25   : > { %v359_v6 = vld [vmem:[%s2319_s2] sm:$0xff]  ;;  %1484 = vset.pattern.permute.xlu2 %v1605_v7  ;;  %1483 = vset.pattern.permute.xlu1 %v1605_v7  ;;  %s1358_s29 = sshll.u32 %s1711_s28, 5  ;;  %v340_v12 = vld [vmem:[%s2318_s1 + $0xe8] sm:$0xff]  ;;  %v362_v15 = vld [vmem:[%s2319_s2 + $0x18] sm:$0xff]  ;;  %s1425_s17 = sshll.u32 %s1665_s25, 3 }
  0x26   : > { %1482 = vset.pattern.permute.xlu0 %v1605_v7  ;;  %429 = vperm.xlu2 %1484, %v363_v4   ;;  %s1714_s9 = scalar_lea.vmem [#allocation2], %s1358_s29  ;;  %s1718_s10 = scalar_lea.vmem [#allocation3], %s1358_s29  ;;  %v311_v10 = vld [vmem:[%s2318_s1] sm:$0xff]  ;;  %v364_v13 = vld [vmem:[%s2319_s2 + $0x28] sm:$0xff]  ;;  %v329_v18 = vld [vmem:[%s2318_s1 + $0x90] sm:$0xff] }
  0x27   : > { %419 = vperm.xlu1 %1483, %v361_v5   ;;  %409 = vperm.xlu0 %1482, %v359_v6   ;;  %v308_v8 = vld [vmem:[%s1714_s9 + $0x8] sm:$0xff]  ;;  %v307_v9 = vld [vmem:[%s1714_s9] sm:$0xff]  ;;  %v341_v19 = vld [vmem:[%s2318_s1 + $0xf0] sm:$0xff]  ;;  %s1240_s20 = sshll.u32 %s1718_s10, 4  ;;  %s1239_s11 = scalar_lea.hbm %s2322_s5, %s1425_s17  ;;  %s2267_s20 = int_to_ptr.vmem [resolvable:$true] %s1240_s20 }
  0x28   : > { %806 = vmatpush.msra.mxu0 %v308_v8  ;;  %1213 = vst [vmem:[%s1718_s10 + $0x8] sm:$0xff] %v308_v8  ;;  %1428 = vmatpush.msra.mxu1 %v308_v8  ;;  %v351_v14 = vld [vmem:[%s2318_s1 + $0x140] sm:$0xff]  ;;  %v360_v16 = vld [vmem:[%s2319_s2 + $0x8] sm:$0xff]  ;;  %v366_v22 = vld [vmem:[%s2319_s2 + $0x38] sm:$0xff]  ;;  %s306_s12 = scalar_lea.vmem [#allocation5], %s1711_s28  ;;  %s2265_s14 = sshll.u32 %s1254_s19, 4  ;;  %s1259_s14 = int_to_ptr.hbm [resolvable:$true] %s2265_s14 }
  0x29   : > { %1429 = vmatpush.msra.mxu2 %v308_v8  ;;  %1212 = vst [vmem:[%s1718_s10] sm:$0xff] %v307_v9  ;;  %1430 = vmatpush.msra.mxu3 %v308_v8  ;;  %v312_v17 = vld [vmem:[%s2318_s1 + $0x8] sm:$0xff]  ;;  %v367_v20 = vld [vmem:[%s2319_s2 + $0x40] sm:$0xff]  ;;  %v365_v23 = vld [vmem:[%s2319_s2 + $0x30] sm:$0xff]  ;;  %s2263_s13 = sshll.u32 %s306_s12, 4  ;;  %s1242_s25 = sshll.u32 %s1239_s11, 4  ;;  %s1257_s13 = int_to_ptr.vmem [resolvable:$true] %s2263_s13  ;;  %s2271_s25 = int_to_ptr.hbm [resolvable:$true] %s1242_s25 }
  0x2a   : > { %807 = vmatpush.msra.mxu0 %v307_v9  ;;  %1431 = vmatpush.msra.mxu1 %v307_v9  ;;  %v352_v21 = vld [vmem:[%s2318_s1 + $0x148] sm:$0xff]  ;;  %v313_v24 = vld [vmem:[%s2318_s1 + $0x10] sm:$0xff]  ;;  %v330_v25 = vld [vmem:[%s2318_s1 + $0x98] sm:$0xff]  ;;  %s1230_s15 = scalar_lea.sflag [#allocation6], %s1711_s28  ;;  %s1523_s16 = sshra.s32 %s1259_s14, 4  ;;  %s1524_s16 = int_to_ptr.hbm [resolvable:$true] %s1523_s16 }
  0x2b   : > { %1432 = vmatpush.msra.mxu2 %v307_v9  ;;  %1360 = vmatmul.msk.f32.vlgmr.msra.gmra.mxu0 %vm647_vm0, %v311_v10  ;;  %v342_v26 = vld [vmem:[%s2318_s1 + $0xf8] sm:$0xff]  ;;  %v353_v28 = vld [vmem:[%s2318_s1 + $0x150] sm:$0xff]  ;;  %v368_v30 = vld [vmem:[%s2319_s2 + $0x48] sm:$0xff]  ;;  %s1525_s17 = scalar_lea.hbm %s1524_s16, 1  ;;  %s1529_s19 = scalar_lea.hbm %s2323_s6, 2 }
  0x2c   : > { %1377 = vmatmul.msk.f32.vlgmr.msra.gmra.mxu1 %vm647_vm0, %v328_v11  ;;  %1389 = vmatmul.msk.f32.vlgmr.msra.gmra.mxu2 %vm647_vm0, %v340_v12  ;;  %v370_v27 = vld [vmem:[%s2319_s2 + $0x58] sm:$0xff]  ;;  %v369_v29 = vld [vmem:[%s2319_s2 + $0x50] sm:$0xff]  ;;  %v331_v32 = vld [vmem:[%s2318_s1 + $0xa0] sm:$0xff]  ;;  %p1526_p13 = scmp.ne.s32.totalorder %s1524_s16, %s1525_s17  ;;  %p1530_p2 = scmp.lt.s32.totalorder %s1524_s16, %s2323_s6 }
  0x2d   : > { %1433 = vmatpush.msra.mxu3 %v307_v9  ;;  %v314_v31 = vld [vmem:[%s2318_s1 + $0x18] sm:$0xff]  ;;  %v343_v33 = vld [vmem:[%s2318_s1 + $0x100] sm:$0xff]  ;;  %v373_v34 = vld [vmem:[%s2319_s2 + $0x70] sm:$0xff]  ;;  %p1531_p3 = scmp.lt.s32.totalorder %s1529_s19, %s1525_s17 }
  0x2e   : > { %434 = vperm.xlu2 %1484, %v364_v13   ;;  %1400 = vmatmul.msk.f32.vlgmr.msra.gmra.mxu3 %vm647_vm0, %v351_v14  ;;  %v354_v35 = vld [vmem:[%s2318_s1 + $0x158] sm:$0xff]  ;;  %v372_v36 = vld [vmem:[%s2319_s2 + $0x68] sm:$0xff]  ;;  %v371_v37 = vld [vmem:[%s2319_s2 + $0x60] sm:$0xff]  ;;  %p1527_p0 = pnand %p1526_p13, %p1683_p6 }
  0x2f   : > { %424 = vperm.xlu1 %1483, %v362_v15   ;;  %414 = vperm.xlu0 %1482, %v360_v16   ;;  %v315_v38 = vld [vmem:[%s2318_s1 + $0x20] sm:$0xff]  ;;  %v332_v39 = vld [vmem:[%s2318_s1 + $0xa8] sm:$0xff]  ;;  %v374_v44 = vld [vmem:[%s2319_s2 + $0x78] sm:$0xff]  ;;  %p1532_p4 = por %p1531_p3, %p1530_p2 }
  0x30   : > { %v344_v40 = vld [vmem:[%s2318_s1 + $0x108] sm:$0xff]  ;;  %v355_v42 = vld [vmem:[%s2318_s1 + $0x160] sm:$0xff]  ;;  %v333_v46 = vld [vmem:[%s2318_s1 + $0xb0] sm:$0xff]  ;;  %p1528_p1 = pneg %p1527_p0 }
  0x31   : > { %v376_v41 = vld [vmem:[%s2319_s2 + $0x88] sm:$0xff]  ;;  %v375_v43 = vld [vmem:[%s2319_s2 + $0x80] sm:$0xff]  ;;  %v345_v47 = vld [vmem:[%s2318_s1 + $0x110] sm:$0xff] }
  0x32   : > { %v316_v45 = vld [vmem:[%s2318_s1 + $0x28] sm:$0xff]  ;;  %v390_v48 = vld [vmem:[%s2319_s2 + $0xf8] sm:$0xff]  ;;  %v377_v51 = vld [vmem:[%s2319_s2 + $0x90] sm:$0xff]  ;;  %p1533_p5 = pnand %p1532_p4, %p1528_p1 }
  0x33   : > { %1361 = vmatmul.msk.f32.gmra.mxu0 %vm647_vm0, %v312_v17  ;;  %v356_v49 = vld [vmem:[%s2318_s1 + $0x168] sm:$0xff]  ;;  %v378_v50 = vld [vmem:[%s2319_s2 + $0x98] sm:$0xff]  ;;  %v317_v52 = vld [vmem:[%s2318_s1 + $0x30] sm:$0xff] }
  0x34   : > { %1378 = vmatmul.msk.f32.gmra.mxu1 %vm647_vm0, %v329_v18  ;;  %1390 = vmatmul.msk.f32.gmra.mxu2 %vm647_vm0, %v341_v19  ;;  %v334_v53 = vld [vmem:[%s2318_s1 + $0xb8] sm:$0xff]  ;;  %v388_v55 = vld [vmem:[%s2319_s2 + $0xe8] sm:$0xff]  ;;  %v357_v56 = vld [vmem:[%s2318_s1 + $0x170] sm:$0xff] }
  0x35   : > { %v346_v54 = vld [vmem:[%s2318_s1 + $0x118] sm:$0xff]  ;;  %v389_v58 = vld [vmem:[%s2319_s2 + $0xf0] sm:$0xff]  ;;  %v335_v60 = vld [vmem:[%s2318_s1 + $0xc0] sm:$0xff] }
  0x36   : > { %449 = vperm.xlu2 %1484, %v367_v20   ;;  %1401 = vmatmul.msk.f32.gmra.mxu3 %vm647_vm0, %v352_v21  ;;  %v406_v57 = vld [vmem:[%s2319_s2 + $0x178] sm:$0xff]  ;;  %v347_v61 = vld [vmem:[%s2318_s1 + $0x120] sm:$0xff]  ;;  %v404_v62 = vld [vmem:[%s2319_s2 + $0x168] sm:$0xff] }
  0x37   : > { %444 = vperm.xlu1 %1483, %v366_v22   ;;  %439 = vperm.xlu0 %1482, %v365_v23   ;;  %v318_v59 = vld [vmem:[%s2318_s1 + $0x38] sm:$0xff]  ;;  %v387_v0 = vld [vmem:[%s2319_s2 + $0xe0] sm:$0xff]  ;;  %v405_v1 = vld [vmem:[%s2319_s2 + $0x170] sm:$0xff] }
  0x38   : > { %v358_v63 = vld [vmem:[%s2318_s1 + $0x178] sm:$0xff]  ;;  %v319_v2 = vld [vmem:[%s2318_s1 + $0x40] sm:$0xff]  ;;  %v336_v3 = vld [vmem:[%s2318_s1 + $0xc8] sm:$0xff] }
  0x39   : > { %v348_v4 = vld [vmem:[%s2318_s1 + $0x128] sm:$0xff]  ;;  %v385_v5 = vld [vmem:[%s2319_s2 + $0xd0] sm:$0xff]  ;;  %v403_v6 = vld [vmem:[%s2319_s2 + $0x160] sm:$0xff] }
  0x3a   : > { %v386_v7 = vld [vmem:[%s2319_s2 + $0xd8] sm:$0xff]  ;;  %v320_v8 = vld [vmem:[%s2318_s1 + $0x48] sm:$0xff]  ;;  %v337_v9 = vld [vmem:[%s2318_s1 + $0xd0] sm:$0xff] }
  0x3b   : > { %1362 = vmatmul.msk.f32.gmra.mxu0 %vm647_vm0, %v313_v24  ;;  %v349_v10 = vld [vmem:[%s2318_s1 + $0x130] sm:$0xff]  ;;  %v384_v12 = vld [vmem:[%s2319_s2 + $0xc8] sm:$0xff]  ;;  %v402_v13 = vld [vmem:[%s2319_s2 + $0x158] sm:$0xff] }
  0x3c   : > { %1379 = vmatmul.msk.f32.gmra.mxu1 %vm647_vm0, %v330_v25  ;;  %1391 = vmatmul.msk.f32.gmra.mxu2 %vm647_vm0, %v342_v26  ;;  %v401_v11 = vld [vmem:[%s2319_s2 + $0x150] sm:$0xff]  ;;  %v338_v15 = vld [vmem:[%s2318_s1 + $0xd8] sm:$0xff]  ;;  %v400_v18 = vld [vmem:[%s2319_s2 + $0x148] sm:$0xff] }
  0x3d   : > { %v321_v14 = vld [vmem:[%s2318_s1 + $0x50] sm:$0xff]  ;;  %v350_v16 = vld [vmem:[%s2318_s1 + $0x138] sm:$0xff]  ;;  %v383_v19 = vld [vmem:[%s2319_s2 + $0xc0] sm:$0xff] }
  0x3e   : > { %464 = vperm.xlu2 %1484, %v370_v27   ;;  %1402 = vmatmul.msk.f32.gmra.mxu3 %vm647_vm0, %v353_v28  ;;  %v382_v17 = vld [vmem:[%s2319_s2 + $0xb8] sm:$0xff]  ;;  %v339_v22 = vld [vmem:[%s2318_s1 + $0xe0] sm:$0xff]  ;;  %v381_v24 = vld [vmem:[%s2319_s2 + $0xb0] sm:$0xff] }
  0x3f   : > { %459 = vperm.xlu1 %1483, %v369_v29   ;;  %454 = vperm.xlu0 %1482, %v368_v30   ;;  %v322_v21 = vld [vmem:[%s2318_s1 + $0x58] sm:$0xff]  ;;  %v399_v25 = vld [vmem:[%s2319_s2 + $0x140] sm:$0xff]  ;;  %v397_v29 = vld [vmem:[%s2319_s2 + $0x130] sm:$0xff] }
  0x40   : > { %v398_v23 = vld [vmem:[%s2319_s2 + $0x138] sm:$0xff]  ;;  %v323_v27 = vld [vmem:[%s2318_s1 + $0x60] sm:$0xff]  ;;  %v380_v30 = vld [vmem:[%s2319_s2 + $0xa8] sm:$0xff] }
  0x41   : > { %v379_v28 = vld [vmem:[%s2319_s2 + $0xa0] sm:$0xff] }
  0x43   : > { %1363 = vmatmul.msk.f32.gmra.mxu0 %vm647_vm0, %v314_v31 }
  0x44   : > { %1380 = vmatmul.msk.f32.gmra.mxu1 %vm647_vm0, %v331_v32  ;;  %1392 = vmatmul.msk.f32.gmra.mxu2 %vm647_vm0, %v343_v33  ;;  %v324_v32 = vld [vmem:[%s2318_s1 + $0x68] sm:$0xff]  ;;  %v394_v33 = vld [vmem:[%s2319_s2 + $0x118] sm:$0xff] }
  0x46   : > { %479 = vperm.xlu2 %1484, %v373_v34   ;;  %1403 = vmatmul.msk.f32.gmra.mxu3 %vm647_vm0, %v354_v35  ;;  %v395_v34 = vld [vmem:[%s2319_s2 + $0x120] sm:$0xff]  ;;  %v396_v35 = vld [vmem:[%s2319_s2 + $0x128] sm:$0xff] }
  0x47   : > { %474 = vperm.xlu1 %1483, %v372_v36   ;;  %469 = vperm.xlu0 %1482, %v371_v37   ;;  %v325_v37 = vld [vmem:[%s2318_s1 + $0x70] sm:$0xff] }
  0x4b   : > { %1364 = vmatmul.msk.f32.gmra.mxu0 %vm647_vm0, %v315_v38 }
  0x4c   : > { %1381 = vmatmul.msk.f32.gmra.mxu1 %vm647_vm0, %v332_v39  ;;  %1393 = vmatmul.msk.f32.gmra.mxu2 %vm647_vm0, %v344_v40  ;;  %v391_v40 = vld [vmem:[%s2319_s2 + $0x100] sm:$0xff] }
  0x4e   : > { %494 = vperm.xlu2 %1484, %v376_v41   ;;  %1404 = vmatmul.msk.f32.gmra.mxu3 %vm647_vm0, %v355_v42  ;;  %v392_v41 = vld [vmem:[%s2319_s2 + $0x108] sm:$0xff]  ;;  %v393_v42 = vld [vmem:[%s2319_s2 + $0x110] sm:$0xff] }
  0x4f   : > { %489 = vperm.xlu1 %1483, %v375_v43   ;;  %484 = vperm.xlu0 %1482, %v374_v44   ;;  %v326_v44 = vld [vmem:[%s2318_s1 + $0x78] sm:$0xff] }
  0x53   : > { %1365 = vmatmul.msk.f32.gmra.mxu0 %vm647_vm0, %v316_v45 }
  0x54   : > { %1382 = vmatmul.msk.f32.gmra.mxu1 %vm647_vm0, %v333_v46  ;;  %1394 = vmatmul.msk.f32.gmra.mxu2 %vm647_vm0, %v345_v47  ;;  %v1412_v47 = vld [vmem:[%s2321_s4 + $0x20] sm:$0xff] }
  0x56   : > { %564 = vperm.xlu2 %1484, %v390_v48   ;;  %1405 = vmatmul.msk.f32.gmra.mxu3 %vm647_vm0, %v356_v49  ;;  %v1006_v48 = vld [vmem:[%s2321_s4 + $0x8] sm:$0xff]  ;;  %v1005_v49 = vld [vmem:[%s2321_s4] sm:$0xff] }
  0x57   : > { %504 = vperm.xlu1 %1483, %v378_v50   ;;  %499 = vperm.xlu0 %1482, %v377_v51   ;;  %v327_v51 = vld [vmem:[%s2318_s1 + $0x80] sm:$0xff] }
  0x5b   : > { %1366 = vmatmul.msk.f32.gmra.mxu0 %vm647_vm0, %v317_v52 }
  0x5c   : > { %1383 = vmatmul.msk.f32.gmra.mxu1 %vm647_vm0, %v334_v53  ;;  %1395 = vmatmul.msk.f32.gmra.mxu2 %vm647_vm0, %v346_v54 }
  0x5e   : > { %554 = vperm.xlu2 %1484, %v388_v55   ;;  %1406 = vmatmul.msk.f32.gmra.mxu3 %vm647_vm0, %v357_v56 }
  0x5f   : > { %644 = vperm.xlu1 %1483, %v406_v57   ;;  %559 = vperm.xlu0 %1482, %v389_v58   ;;  %v1421_v58 = vld [vmem:[%s2321_s4 + $0x48] sm:$0xff] }
  0x63   : > { %1367 = vmatmul.msk.f32.gmra.mxu0 %vm647_vm0, %v318_v59  ;;  %v1420_v59 = vld [vmem:[%s2321_s4 + $0x40] sm:$0xff] }
  0x64   : > { %1384 = vmatmul.msk.f32.gmra.mxu1 %vm647_vm0, %v335_v60  ;;  %1396 = vmatmul.msk.f32.gmra.mxu2 %vm647_vm0, %v347_v61  ;;  %v1413_v60 = vld [vmem:[%s2321_s4 + $0x28] sm:$0xff] }
  0x66   : > { %634 = vperm.xlu2 %1484, %v404_v62   ;;  %1407 = vmatmul.msk.f32.gmra.mxu3 %vm647_vm0, %v358_v63 }
  0x67   : > { %549 = vperm.xlu1 %1483, %v387_v0   ;;  %639 = vperm.xlu0 %1482, %v405_v1  }
  0x6b   : > { %1368 = vmatmul.msk.f32.gmra.mxu0 %vm647_vm0, %v319_v2 }
  0x6c   : > { %1385 = vmatmul.msk.f32.gmra.mxu1 %vm647_vm0, %v336_v3  ;;  %1397 = vmatmul.msk.f32.gmra.mxu2 %vm647_vm0, %v348_v4  ;;  %v1414_v4 = vld [vmem:[%s2321_s4 + $0x30] sm:$0xff] }
  0x6e   : > { %539 = vperm.xlu2 %1484, %v385_v5  }
  0x6f   : > { %629 = vperm.xlu1 %1483, %v403_v6   ;;  %544 = vperm.xlu0 %1482, %v386_v7   ;;  %v1008_v6 = vld [vmem:[%s2321_s4 + $0x18] sm:$0xff]  ;;  %v1007_v7 = vld [vmem:[%s2321_s4 + $0x10] sm:$0xff] }
  0x73   : > { %1369 = vmatmul.msk.f32.gmra.mxu0 %vm647_vm0, %v320_v8 }
  0x74   : > { %1386 = vmatmul.msk.f32.gmra.mxu1 %vm647_vm0, %v337_v9  ;;  %1398 = vmatmul.msk.f32.gmra.mxu2 %vm647_vm0, %v349_v10 }
  0x76   : > { %619 = vperm.xlu2 %1484, %v401_v11  }
  0x77   : > { %534 = vperm.xlu1 %1483, %v384_v12   ;;  %624 = vperm.xlu0 %1482, %v402_v13  }
  0x7b   : > { %1370 = vmatmul.msk.f32.gmra.mxu0 %vm647_vm0, %v321_v14 }
  0x7c   : > { %1387 = vmatmul.msk.f32.gmra.mxu1 %vm647_vm0, %v338_v15  ;;  %1399 = vmatmul.msk.f32.gmra.mxu2 %vm647_vm0, %v350_v16  ;;  %v1423_v15 = vld [vmem:[%s2321_s4 + $0x58] sm:$0xff]  ;;  %v1422_v16 = vld [vmem:[%s2321_s4 + $0x50] sm:$0xff] }
  0x7e   : > { %524 = vperm.xlu2 %1484, %v382_v17   ;;  %v1415_v17 = vld [vmem:[%s2321_s4 + $0x38] sm:$0xff] }
  0x7f   : > { %614 = vperm.xlu1 %1483, %v400_v18   ;;  %529 = vperm.xlu0 %1482, %v383_v19  }
  0x80   : > { %v1985_v20 = vpop.permute.xlu2 %429 }
  0x83   : > { %1371 = vmatmul.msk.f32.gmra.mxu0 %vm647_vm0, %v322_v21 }
  0x84   : > { %1388 = vmatmul.msk.f32.gmra.mxu1 %vm647_vm0, %v339_v22 }
  0x86   : > { %604 = vperm.xlu2 %1484, %v398_v23  }
  0x87   : > { %519 = vperm.xlu1 %1483, %v381_v24   ;;  %609 = vperm.xlu0 %1482, %v399_v25  }
  0x88   : > { %v2004_v26 = vpop.permute.xlu2 %434 }
  0x8b   : > { %1372 = vmatmul.msk.f32.gmra.mxu0 %vm647_vm0, %v323_v27 }
  0x8e   : > { %509 = vperm.xlu2 %1484, %v379_v28  }
  0x8f   : > { %599 = vperm.xlu1 %1483, %v397_v29   ;;  %514 = vperm.xlu0 %1482, %v380_v30  }
  0x90   : > { %v2019_v31 = vpop.permute.xlu2 %449 }
  0x93   : > { %1373 = vmatmul.msk.f32.gmra.mxu0 %vm647_vm0, %v324_v32 }
  0x96   : > { %584 = vperm.xlu2 %1484, %v394_v33  }
  0x97   : > { %589 = vperm.xlu1 %1483, %v395_v34   ;;  %594 = vperm.xlu0 %1482, %v396_v35  }
  0x98   : > { %v2034_v36 = vpop.permute.xlu2 %464 }
  0x99   : > { %v420_v38 = vpop.permute.xlu1 %419  ;;  %v410_v39 = vpop.permute.xlu0 %409 }
  0x9b   : > { %1374 = vmatmul.msk.f32.gmra.mxu0 %vm647_vm0, %v325_v37 }
  0x9e   : > { %569 = vperm.xlu2 %1484, %v391_v40  }
  0x9f   : > { %574 = vperm.xlu1 %1483, %v392_v41   ;;  %579 = vperm.xlu0 %1482, %v393_v42  }
  0xa0   : > { %v2049_v43 = vpop.permute.xlu2 %479 }
  0xa1   : > { %v425_v45 = vpop.permute.xlu1 %424  ;;  %v415_v46 = vpop.permute.xlu0 %414 }
  0xa3   : > { %1375 = vmatmul.msk.f32.gmra.mxu0 %vm647_vm0, %v326_v44 }
  0xa6   : > { %1082 = vperm.xlu2 %1484, %v1412_v47  }
  0xa7   : > { %1016 = vperm.xlu1 %1483, %v1006_v48   ;;  %1011 = vperm.xlu0 %1482, %v1005_v49  }
  0xa8   : > { %v809_v50 = vpop.f32.mrf.mxu0  ;;  %v495_v55 = vpop.permute.xlu2 %494 }
  0xa9   : > { %v2067_v52 = vpop.permute.xlu1 %444  ;;  %v2069_v53 = vpop.permute.xlu0 %439  ;;  %v2071_v54 = vadd.f32 %v809_v50, %v410_v39 }
  0xaa   : > { %v860_v56 = vpop.f32.mrf.mxu1 }
  0xab   : > { %2326 = vst [vmem:[#allocation9_spill] sm:$0xff] %v2071_v54  ;;  %v2073_v57 = vadd.f32 %v860_v56, %v495_v55  ;;  %1376 = vmatmul.msk.f32.gmra.mxu0 %vm647_vm0, %v327_v51 }
  0xae   : > { %1158 = vperm.xlu2 %1484, %v1421_v58  }
  0xaf   : > { %1153 = vperm.xlu1 %1483, %v1420_v59   ;;  %1087 = vperm.xlu0 %1482, %v1413_v60   ;;  %v896_v61 = vpop.f32.mrf.mxu2 }
  0xb0   : > { %v812_v62 = vpop.f32.mrf.mxu0  ;;  %v565_v5 = vpop.permute.xlu2 %564 }
  0xb1   : > { %v2085_v63 = vpop.permute.xlu1 %459  ;;  %v2087_v0 = vpop.permute.xlu0 %454  ;;  %v2089_v1 = vadd.f32 %v812_v62, %v415_v46 }
  0xb2   : > { %v863_v2 = vpop.f32.mrf.mxu1  ;;  %v2091_v3 = vpop.f32.mrf.mxu3 }
  0xb3   : > { %2327 = vst [vmem:[#allocation10_spill] sm:$0xff] %v2089_v1 }
  0xb6   : > { %1092 = vperm.xlu2 %1484, %v1414_v4  }
  0xb7   : > { %1026 = vperm.xlu1 %1483, %v1008_v6   ;;  %1021 = vperm.xlu0 %1482, %v1007_v7   ;;  %v899_v8 = vpop.f32.mrf.mxu2 }
  0xb8   : > { %v815_v9 = vpop.f32.mrf.mxu0  ;;  %v555_v18 = vpop.permute.xlu2 %554 }
  0xb9   : > { %v2102_v10 = vpop.permute.xlu1 %474  ;;  %v2104_v11 = vpop.permute.xlu0 %469  ;;  %v2106_v12 = vadd.f32 %v815_v9, %v420_v38  ;;  %v897_v46 = vadd.f32 %v896_v61, %v555_v18 }
  0xba   : > { %v866_v13 = vpop.f32.mrf.mxu1  ;;  %v2108_v14 = vpop.f32.mrf.mxu3 }
  0xbb   : > { %2328 = vst [vmem:[#allocation11_spill] sm:$0xff] %v2106_v12  ;;  %v982_v55 = vmax.f32 %v897_v46, 0.0 }
  0xbe   : > { %1168 = vperm.xlu2 %1484, %v1423_v15  }
  0xbf   : > { %1163 = vperm.xlu1 %1483, %v1422_v16   ;;  %1097 = vperm.xlu0 %1482, %v1415_v17   ;;  %v902_v19 = vpop.f32.mrf.mxu2 }
  0xc0   : > { %v903_v21 = vadd.f32 %v902_v19, %v565_v5  ;;  %v818_v22 = vpop.f32.mrf.mxu0  ;;  %v635_v32 = vpop.permute.xlu2 %634 }
  0xc1   : > { %v2119_v23 = vpop.permute.xlu1 %489  ;;  %v2121_v24 = vpop.permute.xlu0 %484  ;;  %v2123_v25 = vadd.f32 %v818_v22, %v425_v45 }
  0xc2   : > { %v984_v27 = vmax.f32 %v903_v21, 0.0  ;;  %v2125_v28 = vpop.f32.mrf.mxu1  ;;  %v935_v29 = vpop.f32.mrf.mxu3 }
  0xc3   : > { %2329 = vst [vmem:[#allocation12_spill] sm:$0xff] %v2123_v25 }
  0xc4   : > { %1100 = vmatpush.msrb.mxu2 %v984_v27 }
  0xc7   : > { %v2127_v30 = vpop.f32.mrf.mxu2 }
  0xc8   : > { %v2129_v33 = vpop.f32.mrf.mxu0  ;;  %v2143_v50 = vpop.permute.xlu2 %539 }
  0xc9   : > { %v505_v34 = vpop.permute.xlu1 %504  ;;  %v500_v35 = vpop.permute.xlu0 %499 }
  0xca   : > { %v2131_v37 = vadd.f32 %v866_v13, %v505_v34  ;;  %v2133_v38 = vadd.f32 %v863_v2, %v500_v35  ;;  %v2135_v39 = vpop.f32.mrf.mxu1  ;;  %v938_v40 = vpop.f32.mrf.mxu3 }
  0xcf   : > { %v2137_v41 = vpop.f32.mrf.mxu2 }
  0xd0   : > { %v2139_v42 = vpop.f32.mrf.mxu0  ;;  %v620_v4 = vpop.permute.xlu2 %619 }
  0xd1   : > { %v645_v44 = vpop.permute.xlu1 %644  ;;  %v560_v45 = vpop.permute.xlu0 %559  ;;  %v936_v25 = vadd.f32 %v935_v29, %v620_v4 }
  0xd2   : > { %v900_v47 = vadd.f32 %v899_v8, %v560_v45  ;;  %v2141_v48 = vpop.f32.mrf.mxu1  ;;  %v941_v49 = vpop.f32.mrf.mxu3 }
  0xd4   : > { %v983_v51 = vmax.f32 %v900_v47, 0.0 }
  0xd6   : > { %1101 = vmatpush.msrb.mxu2 %v983_v51 }
  0xd7   : > { %v2145_v56 = vpop.f32.mrf.mxu2 }
  0xd8   : > { %v827_v58 = vpop.f32.mrf.mxu0  ;;  %1102 = vmatpush.msrb.mxu2 %v982_v55  ;;  %v2163_v17 = vpop.permute.xlu2 %524 }
  0xd9   : > { %v2147_v59 = vpop.permute.xlu1 %549  ;;  %v640_v60 = vpop.permute.xlu0 %639  ;;  %v2150_v62 = vadd.f32 %v827_v58, %v2069_v53 }
  0xda   : > { %v2152_v61 = vpop.f32.mrf.mxu1  ;;  %v944_v2 = vpop.f32.mrf.mxu3 }
  0xdb   : > { %2330 = vst [vmem:[#allocation13_spill] sm:$0xff] %v2150_v62  ;;  %v945_v35 = vadd.f32 %v944_v2, %v635_v32 }
  0xdd   : > { %v998_v55 = vmax.f32 %v945_v35, 0.0 }
  0xdf   : > { %v2154_v5 = vpop.f32.mrf.mxu2 }
  0xe0   : > { %v830_v6 = vpop.f32.mrf.mxu0  ;;  %v605_v1 = vpop.permute.xlu2 %604 }
  0xe1   : > { %v630_v7 = vpop.permute.xlu1 %629  ;;  %v545_v8 = vpop.permute.xlu0 %544  ;;  %v2157_v9 = vadd.f32 %v830_v6, %v2067_v52 }
  0xe2   : > { %v2159_v13 = vpop.f32.mrf.mxu1  ;;  %v947_v15 = vpop.f32.mrf.mxu3  ;;  %v942_v46 = vadd.f32 %v941_v49, %v630_v7 }
  0xe3   : > { %v948_v27 = vadd.f32 %v947_v15, %v640_v60 }
  0xe4   : > { %v997_v62 = vmax.f32 %v942_v46, 0.0 }
  0xe5   : > { %v999_v52 = vmax.f32 %v948_v27, 0.0 }
  0xe7   : > { %v2161_v16 = vpop.f32.mrf.mxu2 }
  0xe8   : > { %v2165_v53 = vpop.f32.mrf.mxu0  ;;  %v510_v29 = vpop.permute.xlu2 %509 }
  0xe9   : > { %v535_v18 = vpop.permute.xlu1 %534  ;;  %v625_v19 = vpop.permute.xlu0 %624 }
  0xea   : > { %v884_v21 = vpop.f32.mrf.mxu1  ;;  %v950_v22 = vpop.f32.mrf.mxu3  ;;  %v939_v58 = vadd.f32 %v938_v40, %v625_v19 }
  0xeb   : > { %v951_v34 = vadd.f32 %v950_v22, %v645_v44  ;;  %v995_v44 = vmax.f32 %v936_v25, 0.0 }
  0xec   : > { %v996_v60 = vmax.f32 %v939_v58, 0.0 }
  0xed   : > { %v1000_v45 = vmax.f32 %v951_v34, 0.0 }
  0xef   : > { %v920_v47 = vpop.f32.mrf.mxu2  ;;  %1171 = vmatpush.msrb.mxu3 %v1000_v45 }
  0xf0   : > { %v2167_v51 = vpop.f32.mrf.mxu0 }
  0xf1   : > { %v615_v6 = vpop.permute.xlu1 %614  ;;  %v530_v54 = vpop.permute.xlu0 %529  ;;  %1172 = vmatpush.msrb.mxu3 %v999_v52 }
  0xf2   : > { %v887_v12 = vpop.f32.mrf.mxu1  ;;  %v933_v32 = vadd.f32 %v2108_v14, %v615_v6 }
  0xf3   : > { %1173 = vmatpush.msrb.mxu3 %v998_v55 }
  0xf4   : > { %v994_v7 = vmax.f32 %v933_v32, 0.0  ;;  %v885_v32 = vadd.f32 %v884_v21, %v535_v18 }
  0xf5   : > { %1174 = vmatpush.msrb.mxu3 %v997_v62 }
  0xf7   : > { %v923_v49 = vpop.f32.mrf.mxu2  ;;  %1175 = vmatpush.msrb.mxu3 %v996_v60  ;;  %v585_v60 = vpop.permute.xlu2 %584 }
  0xf8   : > { %v2170_v2 = vpop.f32.mrf.mxu0 }
  0xf9   : > { %v520_v15 = vpop.permute.xlu1 %519  ;;  %v610_v40 = vpop.permute.xlu0 %609  ;;  %1176 = vmatpush.msrb.mxu3 %v995_v44 }
  0xfa   : > { %v930_v19 = vadd.f32 %v2091_v3, %v610_v40  ;;  %v890_v22 = vpop.f32.mrf.mxu1  ;;  %v888_v3 = vadd.f32 %v887_v12, %v2143_v50  ;;  %v978_v12 = vmax.f32 %v885_v32, 0.0  ;;  %v915_v50 = vadd.f32 %v2154_v5, %v585_v60 }
  0xfb   : > { %1177 = vmatpush.msrb.mxu3 %v994_v7  ;;  %v891_v52 = vadd.f32 %v890_v22, %v545_v8  ;;  %v882_v7 = vadd.f32 %v2159_v13, %v530_v54  ;;  %v879_v22 = vadd.f32 %v2152_v61, %v2163_v17  ;;  %v870_v61 = vadd.f32 %v2125_v28, %v510_v29 }
  0xfc   : > { %v993_v4 = vmax.f32 %v930_v19, 0.0  ;;  %v979_v40 = vmax.f32 %v888_v3, 0.0  ;;  %v972_v28 = vmax.f32 %v2131_v37, 0.0  ;;  %v1417_v37 = vld [vmem:[%s2320_s3 + $0x48] sm:$0xff] }
  0xfd   : > { %v980_v44 = vmax.f32 %v891_v52, 0.0  ;;  %v977_v21 = vmax.f32 %v882_v7, 0.0  ;;  %v976_v13 = vmax.f32 %v879_v22, 0.0 }
  0xfe   : > { %1178 = vmatpush.msrb.mxu3 %v993_v4  ;;  %v876_v4 = vadd.f32 %v2141_v48, %v520_v15 }
  0xff   : > { %v926_v27 = vpop.f32.mrf.mxu2 }
 0x100   : > { %v927_v34 = vadd.f32 %v926_v27, %v605_v1  ;;  %v2173_v14 = vpop.f32.mrf.mxu0  ;;  %v975_v17 = vmax.f32 %v876_v4, 0.0 }
 0x101   : > { %v600_v25 = vpop.permute.xlu1 %599  ;;  %v515_v62 = vpop.permute.xlu0 %514 }
 0x102   : > { %v992_v35 = vmax.f32 %v927_v34, 0.0  ;;  %v924_v45 = vadd.f32 %v923_v49, %v600_v25  ;;  %v893_v46 = vpop.f32.mrf.mxu1  ;;  %v873_v27 = vadd.f32 %v2135_v39, %v515_v62 }
 0x103   : > { %v894_v55 = vadd.f32 %v893_v46, %v2147_v59 }
 0x104   : > { %v991_v58 = vmax.f32 %v924_v45, 0.0  ;;  %1179 = vmatpush.msrb.mxu3 %v992_v35  ;;  %v974_v15 = vmax.f32 %v873_v27, 0.0  ;;  %v973_v45 = vmax.f32 %v870_v61, 0.0  ;;  %v1002_v27 = vld [vmem:[%s2320_s3 + $0x8] sm:$0xff] }
 0x105   : > { %v981_v6 = vmax.f32 %v894_v55, 0.0 }
 0x106   : > { %1180 = vmatpush.msrb.mxu3 %v991_v58 }
 0x107   : > { %1103 = vmatpush.msrb.mxu2 %v981_v6 }
 0x108   : > { %v845_v1 = vpop.f32.mrf.mxu0 }
 0x109   : > { %1104 = vmatpush.msrb.mxu2 %v980_v44  ;;  %v590_v49 = vpop.permute.xlu1 %589  ;;  %v595_v19 = vpop.permute.xlu0 %594 }
 0x10a   : > { %v918_v8 = vadd.f32 %v2161_v16, %v590_v49  ;;  %v921_v59 = vadd.f32 %v920_v47, %v595_v19  ;;  %v988_v16 = vmax.f32 %v915_v50, 0.0  ;;  %v570_v47 = vpop.permute.xlu2 %569  ;;  %v2333_v50 = vld [vmem:[#allocation11_spill] sm:$0xff] }
 0x10b   : > { %1105 = vmatpush.msrb.mxu2 %v979_v40  ;;  %v906_v39 = vadd.f32 %v2127_v30, %v570_v47  ;;  %v970_v30 = vmax.f32 %v2073_v57, 0.0  ;;  %v843_v57 = vadd.f32 %v2173_v14, %v2034_v36  ;;  %v1408_v36 = vld [vmem:[%s2320_s3 + $0x20] sm:$0xff]  ;;  %v834_v14 = vadd.f32 %v2165_v53, %v2019_v31  ;;  %v1409_v31 = vld [vmem:[%s2320_s3 + $0x28] sm:$0xff]  ;;  %v1004_v47 = vld [vmem:[%s2320_s3 + $0x18] sm:$0xff] }
 0x10c   : > { %v990_v18 = vmax.f32 %v921_v59, 0.0  ;;  %v989_v54 = vmax.f32 %v918_v8, 0.0  ;;  %v822_v53 = vadd.f32 %v2129_v33, %v1985_v20  ;;  %v2331_v8 = vld [vmem:[#allocation13_spill] sm:$0xff]  ;;  %v2334_v20 = vld [vmem:[#allocation10_spill] sm:$0xff] }
 0x10d   : > { %1106 = vmatpush.msrb.mxu2 %v978_v12  ;;  %v985_v29 = vmax.f32 %v906_v39, 0.0  ;;  %v959_v59 = vmax.f32 %v2331_v8, 0.0  ;;  %v954_v33 = vmax.f32 %v2334_v20, 0.0 }
 0x10e   : > { %1181 = vmatpush.msrb.mxu3 %v990_v18  ;;  %v957_v12 = vmax.f32 %v822_v53, 0.0  ;;  %v955_v18 = vmax.f32 %v2333_v50, 0.0 }
 0x10f   : > { %1107 = vmatpush.msrb.mxu2 %v977_v21  ;;  %v2335_v21 = vld [vmem:[#allocation9_spill] sm:$0xff] }
 0x110   : > { %1182 = vmatpush.msrb.mxu3 %v989_v54  ;;  %v848_v34 = vpop.f32.mrf.mxu0  ;;  %v953_v4 = vmax.f32 %v2335_v21, 0.0  ;;  %v1001_v54 = vld [vmem:[%s2320_s3] sm:$0xff] }
 0x111   : > { %1108 = vmatpush.msrb.mxu2 %v976_v13  ;;  %v575_v5 = vpop.permute.xlu1 %574  ;;  %v580_v25 = vpop.permute.xlu0 %579  ;;  %v849_v6 = vadd.f32 %v848_v34, %v2102_v10  ;;  %v1411_v13 = vld [vmem:[%s2320_s3 + $0x38] sm:$0xff] }
 0x112   : > { %v909_v35 = vadd.f32 %v2137_v41, %v575_v5  ;;  %v912_v48 = vadd.f32 %v2145_v56, %v580_v25  ;;  %1183 = vmatpush.msrb.mxu3 %v988_v16  ;;  %v1416_v41 = vld [vmem:[%s2320_s3 + $0x40] sm:$0xff]  ;;  %v971_v56 = vmax.f32 %v2133_v38, 0.0  ;;  %v846_v38 = vadd.f32 %v845_v1, %v2104_v11  ;;  %v1003_v16 = vld [vmem:[%s2320_s3 + $0x10] sm:$0xff]  ;;  %v1083_v25 = vpop.permute.xlu2 %1082 }
 0x113   : > { %1109 = vmatpush.msrb.mxu2 %v975_v17  ;;  %v966_v44 = vmax.f32 %v849_v6, 0.0  ;;  %v837_v11 = vadd.f32 %v2167_v51, %v2087_v0  ;;  %v964_v1 = vmax.f32 %v843_v57, 0.0  ;;  %v1419_v0 = vld [vmem:[%s2320_s3 + $0x58] sm:$0xff]  ;;  %v825_v51 = vadd.f32 %v2139_v42, %v2004_v26 }
 0x114   : > { %v987_v62 = vmax.f32 %v912_v48, 0.0  ;;  %v986_v46 = vmax.f32 %v909_v35, 0.0  ;;  %v965_v10 = vmax.f32 %v846_v38, 0.0  ;;  %v2332_v26 = vld [vmem:[#allocation12_spill] sm:$0xff] }
 0x115   : > { %1110 = vmatpush.msrb.mxu2 %v974_v15  ;;  %v958_v22 = vmax.f32 %v825_v51, 0.0  ;;  %v956_v42 = vmax.f32 %v2332_v26, 0.0 }
 0x116   : > { %1184 = vmatpush.msrb.mxu3 %v987_v62 }
 0x117   : > { %1111 = vmatpush.msrb.mxu2 %v973_v45 }
 0x118   : > { %1185 = vmatpush.msrb.mxu3 %v986_v46  ;;  %v851_v52 = vpop.f32.mrf.mxu0 }
 0x119   : > { %1112 = vmatpush.msrb.mxu2 %v972_v28  ;;  %v852_v58 = vadd.f32 %v851_v52, %v2049_v43  ;;  %v1418_v43 = vld [vmem:[%s2320_s3 + $0x50] sm:$0xff]  ;;  %v1017_v34 = vpop.permute.xlu1 %1016  ;;  %v1012_v17 = vpop.permute.xlu0 %1011 }
 0x11a   : > { %1186 = vmatpush.msrb.mxu3 %v985_v29 }
 0x11b   : > { %1113 = vmatpush.msrb.mxu2 %v971_v56  ;;  %1187 = vmatmul.f32.vlgmr.msrb.gmra.mxu3 %v1416_v41  ;;  %v967_v32 = vmax.f32 %v852_v58, 0.0  ;;  %v1159_v41 = vpop.permute.xlu2 %1158 }
 0x11d   : > { %1114 = vmatpush.msrb.mxu2 %v970_v30 }
 0x120   : > { %v854_v55 = vpop.f32.mrf.mxu0 }
 0x121   : > { %v855_v3 = vadd.f32 %v854_v55, %v2121_v24  ;;  %v840_v24 = vadd.f32 %v2170_v2, %v2085_v63  ;;  %v962_v63 = vmax.f32 %v837_v11, 0.0  ;;  %v960_v2 = vmax.f32 %v2157_v9, 0.0  ;;  %v1410_v9 = vld [vmem:[%s2320_s3 + $0x30] sm:$0xff]  ;;  %v1154_v15 = vpop.permute.xlu1 %1153  ;;  %v1088_v46 = vpop.permute.xlu0 %1087 }
 0x123   : > { %v968_v60 = vmax.f32 %v855_v3, 0.0  ;;  %1190 = vmatmul.f32.gmra.mxu3 %v1417_v37  ;;  %v963_v19 = vmax.f32 %v840_v24, 0.0 }
 0x125   : > { %1029 = vmatpush.msrb.mxu1 %v968_v60 }
 0x127   : > { %1030 = vmatpush.msrb.mxu1 %v967_v32 }
 0x128   : > { %v857_v7 = vpop.f32.mrf.mxu0 }
 0x129   : > { %v858_v40 = vadd.f32 %v857_v7, %v2119_v23  ;;  %1031 = vmatpush.msrb.mxu1 %v966_v44  ;;  %v961_v23 = vmax.f32 %v834_v14, 0.0  ;;  %v1027_v32 = vpop.permute.xlu1 %1026  ;;  %v309_v44 = vld [vmem:[%s1714_s9 + $0x10] sm:$0xff] }
 0x12b   : > { %v969_v49 = vmax.f32 %v858_v40, 0.0  ;;  %1193 = vmatmul.f32.gmra.mxu3 %v1418_v43  ;;  %1032 = vmatpush.msrb.mxu1 %v965_v10  ;;  %v1022_v10 = vpop.permute.xlu0 %1021 }
 0x12d   : > { %1033 = vmatpush.msrb.mxu1 %v964_v1  ;;  %1115 = vmatpush.msrb.mxu2 %v969_v49 }
 0x12e   : > { %1116 = vmatmul.f32.vlgmr.msrb.gmra.mxu2 %v1408_v36 }
 0x12f   : > { %1034 = vmatpush.msrb.mxu1 %v963_v19 }
 0x131   : > { %1035 = vmatpush.msrb.mxu1 %v962_v63  ;;  %v1164_v20 = vpop.permute.xlu1 %1163 }
 0x133   : > { %1196 = vmatmul.f32.gmra.mxu3 %v1419_v0  ;;  %1036 = vmatpush.msrb.mxu1 %v961_v23 }
 0x135   : > { %1037 = vmatpush.msrb.mxu1 %v960_v2  ;;  %v1093_v2 = vpop.permute.xlu2 %1092 }
 0x136   : > { %1119 = vmatmul.f32.gmra.mxu2 %v1409_v31 }
 0x137   : > { %1038 = vmatpush.msrb.mxu1 %v959_v59 }
 0x139   : > { %1039 = vmatpush.msrb.mxu1 %v958_v22 }
 0x13b   : > { %1040 = vmatpush.msrb.mxu1 %v957_v12  ;;  %v310_v12 = vld [vmem:[%s1714_s9 + $0x18] sm:$0xff] }
 0x13d   : > { %1041 = vmatpush.msrb.mxu1 %v956_v42 }
 0x13e   : > { %1122 = vmatmul.f32.gmra.mxu2 %v1410_v9 }
 0x13f   : > { %1042 = vmatpush.msrb.mxu1 %v955_v18 }
 0x141   : > { %1043 = vmatpush.msrb.mxu1 %v954_v33 }
 0x143   : > { %1044 = vmatpush.msrb.mxu1 %v953_v4 }
 0x144   : > { %1045 = vmatmul.f32.vlgmr.msrb.gmra.mxu1 %v1001_v54 }
 0x146   : > { %1125 = vmatmul.f32.gmra.mxu2 %v1411_v13 }
 0x14c   : > { %1048 = vmatmul.f32.gmra.mxu1 %v1002_v27 }
 0x154   : > { %1051 = vmatmul.f32.gmra.mxu1 %v1003_v16 }
 0x15c   : > { %1054 = vmatmul.f32.gmra.mxu1 %v1004_v47 }
 0x19e   : > { %v1188_v5 = vpop.f32.mrf.mxu3 }
 0x19f   : > { %v1189_v62 = vadd.f32 %v1188_v5, %v1154_v15 }
 0x1a6   : > { %v1191_v28 = vpop.f32.mrf.mxu3 }
 0x1a7   : > { %v1192_v55 = vadd.f32 %v1191_v28, %v1159_v41 }
 0x1ae   : > { %v1194_v31 = vpop.f32.mrf.mxu3 }
 0x1af   : > { %v1195_v21 = vadd.f32 %v1194_v31, %v1164_v20 }
 0x1b1   : > { %v1117_v61 = vpop.f32.mrf.mxu2 }
 0x1b2   : > { %v1118_v35 = vadd.f32 %v1117_v61, %v1083_v25 }
 0x1b4   : > { %1485 = vtanh.f32 %v1118_v35 }
 0x1b9   : > { %v1120_v45 = vpop.f32.mrf.mxu2 }
 0x1ba   : > { %v1121_v29 = vadd.f32 %v1120_v45, %v1088_v46  ;;  %v1486_v52 = vpop.eup %1485  ;;  %v1169_v45 = vpop.permute.xlu2 %1168 }
 0x1bb   : > { %v1131_v6 = vmul.f32 1.442695, %v1486_v52 }
 0x1c1   : > { %v1046_v48 = vpop.f32.mrf.mxu1  ;;  %v1123_v40 = vpop.f32.mrf.mxu2 }
 0x1c2   : > { %v1047_v39 = vadd.f32 %v1046_v48, %v1012_v17  ;;  %v1124_v8 = vadd.f32 %v1123_v40, %v1093_v2  ;;  %v1098_v17 = vpop.permute.xlu0 %1097  ;;  %v1197_v48 = vpop.f32.mrf.mxu3 }
 0x1c3   : > { %v1198_v28 = vadd.f32 %v1197_v48, %v1169_v45 }
 0x1c4   : > { %1487 = vtanh.f32 %v1047_v39 }
 0x1c5   : > { %1489 = vtanh.f32 %v1189_v62 }
 0x1c6   : > { %1491 = vtanh.f32 %v1121_v29 }
 0x1c9   : > { %v1049_v56 = vpop.f32.mrf.mxu1  ;;  %v1126_v27 = vpop.f32.mrf.mxu2 }
 0x1ca   : > { %v1488_v30 = vpop.eup %1487  ;;  %v1050_v37 = vadd.f32 %v1049_v56, %v1017_v34  ;;  %v1127_v25 = vadd.f32 %v1126_v27, %v1098_v17 }
 0x1cb   : > { %v1060_v58 = vmul.f32 1.442695, %v1488_v30  ;;  %v1490_v3 = vpop.eup %1489  ;;  %v1139_v57 = vadd.f32 %v1488_v30, %v1486_v52 }
 0x1cc   : > { %1493 = vtanh.f32 %v1050_v37  ;;  %v1202_v60 = vmul.f32 1.442695, %v1490_v3  ;;  %v1492_v38 = vpop.eup %1491 }
 0x1cd   : > { %1495 = vpow2.f32 %v1060_v58  ;;  %v1133_v19 = vmul.f32 1.442695, %v1492_v38  ;;  %v1210_v63 = vadd.f32 %v1490_v3, %v1139_v57 }
 0x1ce   : > { %1497 = vtanh.f32 %v1192_v55 }
 0x1cf   : > { %1499 = vpow2.f32 %v1131_v6 }
 0x1d0   : > { %1501 = vpow2.f32 %v1202_v60 }
 0x1d1   : > { %v1052_v7 = vpop.f32.mrf.mxu1 }
 0x1d2   : > { %v1494_v43 = vpop.eup %1493  ;;  %v1053_v36 = vadd.f32 %v1052_v7, %v1022_v10 }
 0x1d3   : > { %v1496_v24 = vpop.eup %1495  ;;  %v1062_v11 = vmul.f32 1.442695, %v1494_v43  ;;  %v1140_v1 = vadd.f32 %v1494_v43, %v1492_v38 }
 0x1d4   : > { %v1498_v49 = vpop.eup %1497  ;;  %v1064_v14 = vmul.f32 %v1496_v24, %v309_v44 }
 0x1d5   : > { %1503 = vpow2.f32 %v1062_v11  ;;  %v1211_v0 = vadd.f32 %v1498_v49, %v1140_v1  ;;  %v1500_v51 = vpop.eup %1499  ;;  %v1204_v22 = vmul.f32 1.442695, %v1498_v49 }
 0x1d6   : > { %v1066_v23 = vadd.f32 %v1064_v14, %v1053_v36  ;;  %1505 = vpow2.f32 %v1133_v19  ;;  %v1502_v9 = vpop.eup %1501 }
 0x1d7   : > { %v1216_v53 = vadd.f32 %v1211_v0, %v1210_v63  ;;  %1507 = vpow2.f32 %v1204_v22 }
 0x1d8   : > { %v1135_v59 = vmul.f32 %v1500_v51, %v1066_v23 }
 0x1d9   : > { %v1055_v26 = vpop.f32.mrf.mxu1  ;;  %v1217_v42 = vrot.slane %v1216_v53, 4 }
 0x1da   : > { %v1137_v50 = vadd.f32 %v1135_v59, %v1124_v8  ;;  %v1056_v54 = vadd.f32 %v1055_v26, %v1027_v32 }
 0x1db   : > { %v1504_v18 = vpop.eup %1503  ;;  %v1218_v33 = vadd.f32 %v1217_v42, %v1216_v53 }
 0x1dc   : > { %v1206_v4 = vmul.f32 %v1502_v9, %v1137_v50  ;;  %v1065_v13 = vmul.f32 %v1504_v18, %v310_v12  ;;  %v1506_v61 = vpop.eup %1505 }
 0x1dd   : > { %v1219_v16 = vrot.slane %v1218_v33, 2  ;;  %v1508_v62 = vpop.eup %1507 }
 0x1de   : > { %v1208_v47 = vadd.f32 %v1206_v4, %v1195_v21  ;;  %v1067_v34 = vadd.f32 %v1065_v13, %v1056_v54 }
 0x1df   : > { %v1220_v5 = vadd.f32 %v1219_v16, %v1218_v33 }
 0x1e0   : > { %1214 = vst [vmem:[%s1718_s10 + $0x10] sm:$0xff] %v1208_v47  ;;  %v1136_v35 = vmul.f32 %v1506_v61, %v1067_v34 }
 0x1e1   : > { %v1221_v15 = vrot.slane %v1220_v5, 1 }
 0x1e2   : > { %v1138_v39 = vadd.f32 %v1136_v35, %v1127_v25 }
 0x1e3   : > { %v1222_v46 = vadd.f32 %v1221_v15, %v1220_v5 }
 0x1e4   : > { %v1207_v29 = vmul.f32 %v1508_v62, %v1138_v39 }
 0x1e5   : > { %1223 = vst [vmem:[%s306_s12] sm:$0x1] %v1222_v46 }
 0x1e6   : > { %v1209_v52 = vadd.f32 %v1207_v29, %v1198_v28 }
 0x1e7   : > { %1536 = shalt.err (!%p1533_p5)
}
 0x1e8   : > { %1435 = dma.vmem_to_hbm [thread:$0]  (%p1683_p6), %s1257_s13, 16, %s1259_s14, %s1230_s15   ;;  %1215 = vst [vmem:[%s1718_s10 + $0x18] sm:$0xff] %v1209_v52 }
 0x1e9   : > { %s1225_s11 = scalar_lea.sflag [#allocation4], %s1711_s28  ;;  %s1551_s12 = sshra.s32 %s2271_s25, 4  ;;  %s1552_s12 = int_to_ptr.hbm [resolvable:$true] %s1551_s12 }
 0x1ea   : > { %s1553_s9 = scalar_lea.hbm %s1552_s12, 32  ;;  %s1557_s18 = scalar_lea.hbm %s2322_s5, 64 }
 0x1eb   : > { %p1554_p7 = scmp.ne.s32.totalorder %s1552_s12, %s1553_s9  ;;  %p1558_p12 = scmp.lt.s32.totalorder %s1552_s12, %s2322_s5 }
 0x1ec   : > { %p1559_p13 = scmp.lt.s32.totalorder %s1557_s18, %s1553_s9 }
 0x1ed   : > { %p1555_p10 = pnand %p1554_p7, %p1683_p6 }
 0x1ee   : > { %p1560_p0 = por %p1559_p13, %p1558_p12 }
 0x1ef   : > { %p1556_p11 = pneg %p1555_p10 }
 0x1f1   : > { %p1561_p1 = pnand %p1560_p0, %p1556_p11 }
 0x1f3   : > { %1564 = shalt.err (!%p1561_p1)
}
 0x1f4   : > { %s1606_s28 = smov 128   ;;  %s1607_s10 = smov 256  }
 0x1f5   : > { %s1608_s13 = smov 8  }
 0x1f6   : > { %1434 = dma.vmem_to_hbm [thread:$0]  (%p1683_p6), %s2267_s20, 512, %s2271_s25, %s1225_s11, %s1606_s28, %s1607_s10, %s1608_s13  }
 0x1f7 PF: > { %s1270_s14 = sand.u32 1, %s1591_s21   ;;  %p1439_p2 = pnand %p1354_p9, %p1687_p8 }
 0x1f8   : > { %s1271_s15 = scalar_lea.sflag [#allocation4], %s1270_s14 }
 0x1f9   : > { %p1440_p3 = pneg %p1439_p2 }
 0x1fb   : > { %1582 = dma.done.wait (%p1440_p3), %s1271_s15, 512  }
 0x1fc   : > { %1584 = vsyncadd (%p1440_p3), %s1271_s15, 4294966784  ;;  %s1281_s29 = scalar_lea.sflag [#allocation6], %s1270_s14 }
 0x1fd   : > { %1586 = dma.done.wait (%p1440_p3), %s1281_s29, 16  }
 0x1fe   : > { %1588 = vsyncadd (%p1440_p3), %s1281_s29, 4294967280  ;;  %p20_p6 = scmp.ge.s32.totalorder %s1669_s27, 4   ;;  %s2336_s21 = smov %s1595_s22 }
 0x1ff   : > { %s2337_s22 = smov %s1599_s23  ;;  %s2338_s23 = smov %s1681_s30 }
 0x200   : > { %s2339_s24 = smov %s1669_s27  ;;  %22 = sbr.rel (!%p20_p6) target bundleno = 5 (0x5), region = 139 }
 0x205   :  { %1286 = vsyncpa [#allocation4], 1 }
 0x206   :  { %1288 = vsyncpa [#allocation4 + $0x1], 1 }
 0x207   :  { %1289 = vsyncpa [#allocation6], 1 }
 0x208   :  { %1291 = vsyncpa [#allocation6 + $0x1], 1 }

</bundles_post_ra>
